<compile_context>
chip_gen: v7x
topology: tpu7x:2x2x1
jax: 0.10.0
libtpu: 0.0.40
codegen_flags: <defaults>
</compile_context>

<pallas_src>
import functools

import numpy as np

import jax
import jax.numpy as jnp
from jax.experimental import pallas as pl
from jax.experimental.pallas import tpu as pltpu

_HALO = 128  # lane-aligned halo width (must be >= filter_size - 1)


def _round_up(n, m):
    return (n + m - 1) // m * m


def _step_vmem_bytes(d_tile, c_in, c_out, k, isz_cdt, isz_res, isz_out):
    """Approximate VMEM footprint of one grid step (double-buffered blocks + intermediates)."""
    c_half = c_out // 2
    two_d = 2 * d_tile
    block = (isz_cdt * (c_in * d_tile            # main input tile
                        + c_in * _HALO           # halo tile
                        + c_out * k * c_in       # folded conv weight
                        + c_half * c_out         # projection weight
                        + two_d * two_d)         # lane-interleave matrix
             + 4 * c_out                         # bias (f32)
             + isz_res * c_out * two_d           # residual tile (native dtype)
             + isz_out * c_out * two_d)          # fused output tile
    interm = (isz_cdt * (c_in * (d_tile + _HALO)     # xw concat
                         + k * c_in * d_tile         # im2col stack
                         + c_half * two_d            # pair (cast)
                         + c_out * two_d)            # residual cast
              + 4 * (c_out * d_tile + 2 * c_half * two_d)  # f32 acc, shuffled, proj
              + isz_out * c_out * two_d)                   # assembled output
    return 2 * block + interm


def _upsample_kernel(xm_ref, xh_ref, w_ref, b_ref, m_ref, res_ref, pw_ref, out_ref,
                     *, filter_size, relu_slope):
    """One (batch, spatial-tile) step.

    xm_ref : (1, C_in, D_tile)       left-padded input stream, main window (compute dtype)
    xh_ref : (1, C_in, 128)          right halo (zeros past K-1)
    w_ref  : (C_out, K*C_in)         folded conv weight, rows permuted [even ch.; odd ch.]
    b_ref  : (C_out, 1)              conv bias (f32), same row permutation
    m_ref  : (2*D_tile, 2*D_tile)    one-hot lane-interleave matrix (constant, resident)
    res_ref: (1, C_out, 2*D_tile)    residual tile (native dtype)
    pw_ref : (C_half, C_out)         projection weight (torch Linear layout)
    out_ref: (1, C_out, 2*D_tile)    fused final output tile
    """
    d_tile = xm_ref.shape[2]
    c_out = w_ref.shape[0]
    c_half = c_out // 2
    cdt = w_ref.dtype

    # ---- Conv1d as one fat MXU contraction over K*C_in ----
    xw = jnp.concatenate([xm_ref[0], xh_ref[0]], axis=1)          # (C_in, D_tile + 128)
    # im2col stack: row k*C_in + c holds x[c, t + k].
    xstack = jnp.concatenate([xw[:, k:k + d_tile] for k in range(filter_size)],
                             axis=0)                               # (K*C_in, D_tile)
    acc = jnp.dot(w_ref[...], xstack, preferred_element_type=jnp.float32)
    acc = acc + b_ref[...]                                         # bias broadcast add (VPU)
    # TODO(synk): nn.Dropout is identity at inference time; training-mode dropout not implemented.
    act = jnp.where(acc > 0, acc, relu_slope * acc)                # LeakyReLU in f32

    # ---- Subpixel shuffle (ratio=2), fused ----
    # Weight rows were permuted so rows [:C_half] = even output channels, [C_half:] = odd.
    # pair[:, :D_tile] = even, pair[:, D_tile:] = odd; the one-hot matmul interleaves them
    # along the lane axis (out[f, 2t] = even[f, t], out[f, 2t+1] = odd[f, t]).
    # TODO(synk): replace with a stride-2 lane store (pl.ds(..., stride=2)) if/when supported.
    pair = jnp.concatenate([act[:c_half, :], act[c_half:, :]], axis=1).astype(cdt)
    shuffled = jnp.dot(pair, m_ref[...], preferred_element_type=jnp.float32)

    # ---- Residual projection (Linear, bias=False); tile cast in-kernel ----
    proj = jnp.dot(pw_ref[...], res_ref[0].astype(cdt), preferred_element_type=jnp.float32)

    # Channel concat fused: one full-block store of the final tile.
    out_ref[0] = jnp.concatenate([shuffled, proj], axis=0).astype(out_ref.dtype)


def upsampling_block(x, residual, conv_w, conv_b, proj_w, *,
                     relu_slope=0.2, compute_dtype=jnp.bfloat16):
    """UpsamplingBlock forward.

    x        : (B, C_in, D)
    residual : (B, C_out, 2*D)
    conv_w   : (C_out, C_in, K)
    conv_b   : (C_out,)
    proj_w   : (C_out//2, C_out)     (torch nn.Linear weight layout, bias=False)
    returns  : (B, C_out, 2*D)

    compute_dtype controls the MXU operand dtype (f32 accumulation either way); pass
    jnp.float32 (or None) for reference-accuracy matmuls.
    """
    B, C_in, D = x.shape
    C_out, c_in_w, K = conv_w.shape
    assert c_in_w == C_in
    assert K % 2 == 1, "filter_size must be odd so Conv1d(padding=K//2) preserves length"
    assert K - 1 <= _HALO
    assert C_out % 2 == 0
    C_half = C_out // 2
    assert residual.shape == (B, C_out, 2 * D)
    assert proj_w.shape == (C_half, C_out)

    pad = K // 2
    out_dtype = x.dtype
    cdt = jnp.dtype(out_dtype if compute_dtype is None else compute_dtype)
    isz_cdt = cdt.itemsize
    isz_res = jnp.dtype(residual.dtype).itemsize
    isz_out = jnp.dtype(out_dtype).itemsize

    # ---- VMEM capacity (v5e/v6e: 128 MiB, v7x: 64 MiB); conservative fallback ----
    try:
        vmem_cap = int(getattr(pltpu.get_tpu_info(), "vmem_capacity_bytes", 64 * 2 ** 20))
    except Exception:
        vmem_cap = 64 * 2 ** 20
    budget = (vmem_cap * 5) // 8  # ~80 MiB on v5e/v6e, ~40 MiB on v7x

    # ---- spatial tiling: largest lane-dense tile within budget, bounded padding waste ----
    base_pad = _round_up(D, 128)
    d_tile = 128
    for cand in (1024, 512, 256, 128):
        d_pad = _round_up(D, cand)
        if d_pad > base_pad + base_pad // 8:   # cap padding waste at ~12.5%
            continue
        if _step_vmem_bytes(cand, C_in, C_out, K, isz_cdt, isz_res, isz_out) <= budget:
            d_tile = cand
            break
    # Megacore balance: keep >= 2 grid programs when possible (v7x has 2 TensorCores).
    while d_tile > 128 and B * (_round_up(D, d_tile) // d_tile) < 2:
        d_tile //= 2
    D_padded = _round_up(D, d_tile)
    num_tiles = D_padded // d_tile
    step = _step_vmem_bytes(d_tile, C_in, C_out, K, isz_cdt, isz_res, isz_out)
    vmem_limit = int(min(vmem_cap * 7 // 8, max(32 * 2 ** 20, step + 8 * 2 ** 20)))

    # ---- operand prep ----
    # Even/odd channel permutation so the subpixel shuffle is a plain lane interleave of
    # contiguous row blocks.  Folded conv weight: w2[o, k*C_in + c] = conv_w[o, c, k].
    perm = np.concatenate([np.arange(0, C_out, 2), np.arange(1, C_out, 2)])
    w2 = jnp.transpose(conv_w, (0, 2, 1)).reshape(C_out, K * C_in)[perm].astype(cdt)
    b2 = conv_b[perm].reshape(C_out, 1).astype(jnp.float32)
    pw = proj_w.astype(cdt)

    # One-hot lane-interleave matrix: M[s, l] = 1 iff s == (l // 2) + (l % 2) * d_tile.
    lane = np.arange(2 * d_tile)
    src = (lane // 2) + (lane % 2) * d_tile
    m_mat = jnp.asarray((np.arange(2 * d_tile)[:, None] == src[None, :]).astype(np.float32),
                        dtype=cdt)

    # Zero-padded input stream: K//2 zeros on the left, zeros out to D_padded + 128.
    # (Cast fuses with the pad pass; no separate cast-copy.)
    W_full = D_padded + _HALO
    x_full = jnp.pad(x, ((0, 0), (0, 0), (pad, W_full - pad - D))).astype(cdt)

    # Residual stays in its native dtype (in-kernel cast); pad only if D is awkward.
    res_in = residual
    if D_padded != D:
        res_in = jnp.pad(residual, ((0, 0), (0, 0), (0, 2 * (D_padded - D))))

    kernel = functools.partial(_upsample_kernel, filter_size=K, relu_slope=float(relu_slope))

    flops = (2 * B * C_out * K * C_in * D_padded            # conv
             + 2 * B * C_half * C_out * 2 * D_padded        # projection
             + 8 * B * C_half * d_tile * D_padded)          # lane-interleave matmul
    bytes_accessed = (isz_cdt * (B * C_in * (D_padded + num_tiles * _HALO)
                                 + w2.size + pw.size + m_mat.size)
                      + 4 * C_out
                      + isz_res * B * C_out * 2 * D_padded
                      + isz_out * B * C_out * 2 * D_padded)
    cost = pl.CostEstimate(flops=int(flops), transcendentals=0,
                           bytes_accessed=int(bytes_accessed))

    halo_blk = d_tile // _HALO

    out = pl.pallas_call(
        kernel,
        out_shape=jax.ShapeDtypeStruct((B, C_out, 2 * D_padded), out_dtype),
        grid_spec=pltpu.PrefetchScalarGridSpec(
            num_scalar_prefetch=0,
            grid=(B, num_tiles),
            in_specs=[
                pl.BlockSpec((1, C_in, d_tile), lambda b, j: (b, 0, j)),
                # Halo of tile j = next lane-aligned 128-wide block of the same padded stream.
                pl.BlockSpec((1, C_in, _HALO), lambda b, j: (b, 0, (j + 1) * halo_blk)),
                # Constant block index -> weights DMA'd once and stay resident in VMEM.
                pl.BlockSpec((C_out, K * C_in), lambda b, j: (0, 0)),
                pl.BlockSpec((C_out, 1), lambda b, j: (0, 0)),
                pl.BlockSpec((2 * d_tile, 2 * d_tile), lambda b, j: (0, 0)),
                pl.BlockSpec((1, C_out, 2 * d_tile), lambda b, j: (b, 0, j)),
                pl.BlockSpec((C_half, C_out), lambda b, j: (0, 0)),
            ],
            out_specs=pl.BlockSpec((1, C_out, 2 * d_tile), lambda b, j: (b, 0, j)),
        ),
        compiler_params=pltpu.CompilerParams(
            dimension_semantics=("parallel", "parallel"),
            vmem_limit_bytes=vmem_limit),
        cost_estimate=cost,
    )(x_full, x_full, w2, b2, m_mat, res_in, pw)

    if D_padded != D:
        out = out[:, :, :2 * D]
    return out


def _reference(x, residual, conv_w, conv_b, proj_w, relu_slope):
    """Plain-JAX reference mirroring the PyTorch forward (dropout in eval mode)."""
    B, C_in, D = x.shape
    C_out, _, K = conv_w.shape
    pad = K // 2
    xp = jnp.pad(x, ((0, 0), (0, 0), (pad, pad)))
    out = jnp.zeros((B, C_out, D), jnp.float32) + conv_b[None, :, None]
    for k in range(K):
        out = out + jnp.einsum("oc,bcd->bod", conv_w[:, :, k], xp[:, :, k:k + D],
                               precision="highest")
    out = jnp.where(out > 0, out, relu_slope * out)
    C_half = C_out // 2
    out = out.reshape(B, C_half, 2, D).transpose(0, 1, 3, 2).reshape(B, C_half, 2 * D)
    proj = jnp.einsum("jc,bct->bjt", proj_w, residual, precision="highest")
    return jnp.concatenate([out, proj], axis=1)


if __name__ == "__main__":
    # Small synthetic shapes consistent with the module.
    B, C_in, C_out, K, D = 2, 8, 16, 5, 16
    relu_slope = 0.2

    key = jax.random.PRNGKey(0)
    kx, kr, kw, kb, kp = jax.random.split(key, 5)
    x = jax.random.normal(kx, (B, C_in, D), jnp.float32)
    residual = jax.random.normal(kr, (B, C_out, 2 * D), jnp.float32)
    conv_w = jax.random.normal(kw, (C_out, C_in, K), jnp.float32) * 0.1
    conv_b = jax.random.normal(kb, (C_out,), jnp.float32) * 0.1
    proj_w = jax.random.normal(kp, (C_out // 2, C_out), jnp.float32) * 0.1

    ref = _reference(x, residual, conv_w, conv_b, proj_w, relu_slope)

    # Reference-accuracy path (f32 MXU operands).
    fwd32 = jax.jit(functools.partial(upsampling_block, relu_slope=relu_slope,
                                      compute_dtype=jnp.float32))
    out32 = jax.block_until_ready(fwd32(x, residual, conv_w, conv_b, proj_w))
    assert out32.shape == (B, C_out, 2 * D), out32.shape
    assert jnp.allclose(out32, ref, atol=5e-3, rtol=5e-3), \
        float(jnp.max(jnp.abs(out32 - ref)))

    # Default performance path (bf16 MXU operands, f32 accumulation).
    fwd16 = jax.jit(functools.partial(upsampling_block, relu_slope=relu_slope))
    out16 = jax.block_until_ready(fwd16(x, residual, conv_w, conv_b, proj_w))
    assert out16.shape == (B, C_out, 2 * D), out16.shape
    assert jnp.allclose(out16, ref, atol=5e-2, rtol=5e-2), \
        float(jnp.max(jnp.abs(out16 - ref)))

    print("KERNEL_OK")
</pallas_src>

<mosaic_0001>
module attributes {stable_mosaic.version = 11 : i64} {
  func.func @_upsample_kernel(%arg0: i32, %arg1: i32, %arg2: memref<1x8x128xf32, #tpu.memory_space<vmem>>, %arg3: memref<1x8x128xf32, #tpu.memory_space<vmem>>, %arg4: memref<16x40xf32, #tpu.memory_space<vmem>>, %arg5: memref<16x1xf32, #tpu.memory_space<vmem>>, %arg6: memref<256x256xf32, #tpu.memory_space<vmem>>, %arg7: memref<1x16x256xf32, #tpu.memory_space<vmem>>, %arg8: memref<8x16xf32, #tpu.memory_space<vmem>>, %arg9: memref<1x16x256xf32, #tpu.memory_space<vmem>>) attributes {dimension_semantics = [#tpu.dimension_semantics<parallel>, #tpu.dimension_semantics<parallel>], iteration_bounds = array<i64: 2, 1>, scalar_prefetch = 0 : i64, scratch_operands = 0 : i64, tpu.core_type = #tpu.core_type<tc>, window_params = [{transform_indices = @transform_0, window_bounds = array<i64: 1, 8, 128>}, {transform_indices = @transform_1, window_bounds = array<i64: 1, 8, 128>}, {pipeline_mode = #tpu.pipeline_mode<synchronous>, transform_indices = @transform_2, window_bounds = array<i64: 16, 40>}, {pipeline_mode = #tpu.pipeline_mode<synchronous>, transform_indices = @transform_3, window_bounds = array<i64: 16, 1>}, {pipeline_mode = #tpu.pipeline_mode<synchronous>, transform_indices = @transform_4, window_bounds = array<i64: 256, 256>}, {transform_indices = @transform_5, window_bounds = array<i64: 1, 16, 256>}, {pipeline_mode = #tpu.pipeline_mode<synchronous>, transform_indices = @transform_6, window_bounds = array<i64: 8, 16>}, {transform_indices = @transform_7, window_bounds = array<i64: 1, 16, 256>}]} {
    %c0 = arith.constant 0 : index
    %c0_0 = arith.constant 0 : index
    %c0_1 = arith.constant 0 : index
    %0 = vector.load %arg2[%c0, %c0_0, %c0_1] : memref<1x8x128xf32, #tpu.memory_space<vmem>>, vector<1x8x128xf32>
    %1 = vector.shape_cast %0 : vector<1x8x128xf32> to vector<8x128xf32>
    %c0_2 = arith.constant 0 : index
    %c0_3 = arith.constant 0 : index
    %c0_4 = arith.constant 0 : index
    %2 = vector.load %arg3[%c0_2, %c0_3, %c0_4] : memref<1x8x128xf32, #tpu.memory_space<vmem>>, vector<1x8x128xf32>
    %3 = vector.shape_cast %2 : vector<1x8x128xf32> to vector<8x128xf32>
    %4 = tpu.concatenate %1, %3 in 1 : vector<8x128xf32>, vector<8x128xf32> -> vector<8x256xf32>
    %5 = vector.extract_strided_slice %4 {offsets = [0, 0], sizes = [8, 128], strides = [1, 1]} : vector<8x256xf32> to vector<8x128xf32>
    %6 = vector.extract_strided_slice %4 {offsets = [0, 1], sizes = [8, 128], strides = [1, 1]} : vector<8x256xf32> to vector<8x128xf32>
    %7 = vector.extract_strided_slice %4 {offsets = [0, 2], sizes = [8, 128], strides = [1, 1]} : vector<8x256xf32> to vector<8x128xf32>
    %8 = vector.extract_strided_slice %4 {offsets = [0, 3], sizes = [8, 128], strides = [1, 1]} : vector<8x256xf32> to vector<8x128xf32>
    %9 = vector.extract_strided_slice %4 {offsets = [0, 4], sizes = [8, 128], strides = [1, 1]} : vector<8x256xf32> to vector<8x128xf32>
    %10 = tpu.concatenate %5, %6, %7, %8, %9 in 0 : vector<8x128xf32>, vector<8x128xf32>, vector<8x128xf32>, vector<8x128xf32>, vector<8x128xf32> -> vector<40x128xf32>
    %c0_5 = arith.constant 0 : index
    %c0_6 = arith.constant 0 : index
    %11 = vector.load %arg4[%c0_5, %c0_6] : memref<16x40xf32, #tpu.memory_space<vmem>>, vector<16x40xf32>
    %cst = arith.constant dense<0.000000e+00> : vector<16x128xf32>
    %12 = tpu.matmul %11, %10, %cst {dimension_numbers = #tpu.dot_dimension_numbers<[1], [0], [0], [1], [0, 0, 1, 1], [], []>} : vector<16x40xf32>, vector<40x128xf32>, vector<16x128xf32> -> vector<16x128xf32>
    %c0_7 = arith.constant 0 : index
    %c0_8 = arith.constant 0 : index
    %13 = vector.load %arg5[%c0_7, %c0_8] : memref<16x1xf32, #tpu.memory_space<vmem>>, vector<16x1xf32>
    %14 = vector.broadcast %13 : vector<16x1xf32> to vector<16x128xf32>
    %15 = arith.addf %12, %14 : vector<16x128xf32>
    %cst_9 = arith.constant 0.000000e+00 : f32
    %16 = vector.broadcast %cst_9 : f32 to vector<16x128xf32>
    %17 = arith.cmpf ogt, %15, %16 : vector<16x128xf32>
    %cst_10 = arith.constant 2.000000e-01 : f32
    %18 = vector.broadcast %cst_10 : f32 to vector<16x128xf32>
    %19 = arith.mulf %18, %15 : vector<16x128xf32>
    %20 = arith.select %17, %15, %19 : vector<16x128xi1>, vector<16x128xf32>
    %21 = vector.extract_strided_slice %20 {offsets = [0, 0], sizes = [8, 128], strides = [1, 1]} : vector<16x128xf32> to vector<8x128xf32>
    %22 = vector.extract_strided_slice %20 {offsets = [8, 0], sizes = [8, 128], strides = [1, 1]} : vector<16x128xf32> to vector<8x128xf32>
    %23 = tpu.concatenate %21, %22 in 1 : vector<8x128xf32>, vector<8x128xf32> -> vector<8x256xf32>
    %c0_11 = arith.constant 0 : index
    %c0_12 = arith.constant 0 : index
    %24 = vector.load %arg6[%c0_11, %c0_12] : memref<256x256xf32, #tpu.memory_space<vmem>>, vector<256x256xf32>
    %cst_13 = arith.constant dense<0.000000e+00> : vector<8x256xf32>
    %25 = tpu.matmul %23, %24, %cst_13 {dimension_numbers = #tpu.dot_dimension_numbers<[1], [0], [0], [1], [0, 0, 1, 1], [], []>} : vector<8x256xf32>, vector<256x256xf32>, vector<8x256xf32> -> vector<8x256xf32>
    %c0_14 = arith.constant 0 : index
    %c0_15 = arith.constant 0 : index
    %26 = vector.load %arg8[%c0_14, %c0_15] : memref<8x16xf32, #tpu.memory_space<vmem>>, vector<8x16xf32>
    %c0_16 = arith.constant 0 : index
    %c0_17 = arith.constant 0 : index
    %c0_18 = arith.constant 0 : index
    %27 = vector.load %arg7[%c0_16, %c0_17, %c0_18] : memref<1x16x256xf32, #tpu.memory_space<vmem>>, vector<1x16x256xf32>
    %28 = vector.shape_cast %27 : vector<1x16x256xf32> to vector<16x256xf32>
    %cst_19 = arith.constant dense<0.000000e+00> : vector<8x256xf32>
    %29 = tpu.matmul %26, %28, %cst_19 {dimension_numbers = #tpu.dot_dimension_numbers<[1], [0], [0], [1], [0, 0, 1, 1], [], []>} : vector<8x16xf32>, vector<16x256xf32>, vector<8x256xf32> -> vector<8x256xf32>
    %30 = tpu.concatenate %25, %29 in 0 : vector<8x256xf32>, vector<8x256xf32> -> vector<16x256xf32>
    %c0_20 = arith.constant 0 : index
    %c0_21 = arith.constant 0 : index
    %c0_22 = arith.constant 0 : index
    %31 = vector.load %arg9[%c0_20, %c0_21, %c0_22] : memref<1x16x256xf32, #tpu.memory_space<vmem>>, vector<1x16x256xf32>
    %32 = vector.shape_cast %31 : vector<1x16x256xf32> to vector<16x256xf32>
    %33 = vector.shape_cast %30 : vector<16x256xf32> to vector<1x16x256xf32>
    tpu.vector_store %arg9[%c0_20, %c0_21, %c0_22], %33 {strides = array<i32>} : memref<1x16x256xf32, #tpu.memory_space<vmem>>, vector<1x16x256xf32>,
    return
  }
  func.func @transform_0(%arg0: i32, %arg1: i32) -> (i32, i32, i32) {
    %c0_i32 = arith.constant 0 : i32
    %c0_i32_0 = arith.constant 0 : i32
    return %arg0, %c0_i32, %arg1 : i32, i32, i32
  }
  func.func @transform_1(%arg0: i32, %arg1: i32) -> (i32, i32, i32) {
    %c1_i32 = arith.constant 1 : i32
    %0 = arith.addi %arg1, %c1_i32 : i32
    %c1_i32_0 = arith.constant 1 : i32
    %1 = arith.muli %0, %c1_i32_0 : i32
    %c0_i32 = arith.constant 0 : i32
    %c0_i32_1 = arith.constant 0 : i32
    return %arg0, %c0_i32, %1 : i32, i32, i32
  }
  func.func @transform_2(%arg0: i32, %arg1: i32) -> (i32, i32) {
    %c0_i32 = arith.constant 0 : i32
    %c0_i32_0 = arith.constant 0 : i32
    %c0_i32_1 = arith.constant 0 : i32
    return %c0_i32, %c0_i32_0 : i32, i32
  }
  func.func @transform_3(%arg0: i32, %arg1: i32) -> (i32, i32) {
    %c0_i32 = arith.constant 0 : i32
    %c0_i32_0 = arith.constant 0 : i32
    %c0_i32_1 = arith.constant 0 : i32
    return %c0_i32, %c0_i32_0 : i32, i32
  }
  func.func @transform_4(%arg0: i32, %arg1: i32) -> (i32, i32) {
    %c0_i32 = arith.constant 0 : i32
    %c0_i32_0 = arith.constant 0 : i32
    %c0_i32_1 = arith.constant 0 : i32
    return %c0_i32, %c0_i32_0 : i32, i32
  }
  func.func @transform_5(%arg0: i32, %arg1: i32) -> (i32, i32, i32) {
    %c0_i32 = arith.constant 0 : i32
    %c0_i32_0 = arith.constant 0 : i32
    return %arg0, %c0_i32, %arg1 : i32, i32, i32
  }
  func.func @transform_6(%arg0: i32, %arg1: i32) -> (i32, i32) {
    %c0_i32 = arith.constant 0 : i32
    %c0_i32_0 = arith.constant 0 : i32
    %c0_i32_1 = arith.constant 0 : i32
    return %c0_i32, %c0_i32_0 : i32, i32
  }
  func.func @transform_7(%arg0: i32, %arg1: i32) -> (i32, i32, i32) {
    %c0_i32 = arith.constant 0 : i32
    %c0_i32_0 = arith.constant 0 : i32
    return %arg0, %c0_i32, %arg1 : i32, i32, i32
  }
}

</mosaic_0001>

<bundles_post_ra>
// kernel: upsampling_block.1
= control target key start
LH: loop header
LB: loop body
LE: loop exit
PB: predicated region body
PF: predicated region fallthrough
CT: control target
= control target key end

     0   :  { %s1100_s24 = smov 0   ;;  %s1102_s25 = smov 0   ;;  %s1361_s0 = inlined_call_operand.vmem [shape: f32[2,8,256], index: 0, kind: input, shape index: {}, may-alias: {0,1}]   ;;  %s1362_s1 = inlined_call_operand.vmem [shape: f32[2,8,256], index: 1, kind: input, shape index: {}, may-alias: {0,1}]   ;;  %s1363_s2 = inlined_call_operand.vmem [shape: f32[16,40], index: 2, kind: input, shape index: {}]   ;;  %s1364_s3 = inlined_call_operand.vmem [shape: f32[16,1], index: 3, kind: input, shape index: {}]   ;;  %s1365_s4 = inlined_call_operand.vmem [shape: f32[256,256], index: 4, kind: input, shape index: {}]   ;;  %s1366_s5 = inlined_call_operand.vmem [shape: f32[2,16,256], index: 5, kind: input, shape index: {}]   ;;  %s1367_s6 = inlined_call_operand.vmem [shape: f32[8,16], index: 6, kind: input, shape index: {}]   ;;  %s1368_s7 = inlined_call_operand.vmem [shape: f32[2,16,256], index: 7, kind: output, shape index: {}]  }
   0x1   :  { %s1104_s26 = smov 0  }
   0x2 LB: > { %s29_s27 = sadd.s32 1, %s1048_s25  ;;  %p867_p0 = scmp.ge.s32.totalorder %s1052_s26, 1  ;;  %s1052_s26 = sphi %s1104_s26, %s17_s26   ;;  %s1048_s25 = sphi %s1102_s25, %s1370_s25   ;;  %s1044_s24 = sphi %s1100_s24, %s1369_s24  }
   0x3   : > { %p31_p1 = scmp.ge.s32.totalorder %s29_s27, 2  ;;  %p292_p2 = scmp.lt.s32.totalorder %s1052_s26, 3 }
   0x5   : > { %s1372_s27 = smov (%p31_p1, %s29_s27), 0  ;;  %p293_p3 = pnand %p867_p0, %p292_p2 }
   0x6   : > { %p349_p4 = scmp.lt.s32.totalorder (!%p293_p3), %s1044_s24, 1  ;;  %s1054_s13 = smov (!%p293_p3), 127   ;;  %v419_v3 = vld [vmem:[%s1363_s2] sm:$0xff] (!%p293_p3)  ;;  %vm433_vm0 = vcmask (!%p293_p3), 326656   ;;  %v522_v4 = vld [vmem:[%s1365_s4 + $0x8] sm:$0xff] (!%p293_p3)  ;;  %v1056_v5 = vmov (!%p293_p3), 0  }
   0x7   : > { %296 = sbr.rel (%p293_p3) target bundleno = 583 (0x247), region = 48  ;;  %s1055_s14 = smov (!%p293_p3), 125   ;;  %904 = vmatprep.mubr.msk.f32.mxu0 (!%p293_p3), %vm433_vm0, %v419_v3  ;;  %1028 = vset.pattern.permute.xlu1 (!%p293_p3), %v1056_v5  ;;  %v422_v6 = vld [vmem:[%s1364_s3 + $0x8] sm:$0xff] (!%p293_p3)  ;;  %v524_v7 = vld [vmem:[%s1365_s4 + $0x18] sm:$0xff] (!%p293_p3)  ;;  %v521_v8 = vld [vmem:[%s1365_s4] sm:$0xff] (!%p293_p3)  ;;  %vm395_vm1 = vcmask (!%p293_p3), 1039360  }
   0x8   : > { %1029 = vset.pattern.permute.xlu0 (!%p293_p3), %v1056_v5  ;;  %v523_v9 = vld [vmem:[%s1365_s4 + $0x10] sm:$0xff] (!%p293_p3)  ;;  %v915_v10 = vpack.c.bf16 (!%p293_p3), %v524_v7, %v522_v4  ;;  %v526_v12 = vld [vmem:[%s1365_s4 + $0x28] sm:$0xff] (!%p293_p3)  ;;  %v528_v13 = vld [vmem:[%s1365_s4 + $0x38] sm:$0xff] (!%p293_p3)  ;;  %vm409_vm2 = vcmask (!%p293_p3), 1022976   ;;  %vm402_vm3 = vcmask (!%p293_p3), 1031168   ;;  %vm416_vm4 = vcmask (!%p293_p3), 1014784  }
   0x9   : > { %v917_v11 = vpack.c.bf16 (!%p293_p3), %v523_v9, %v521_v8  ;;  %v919_v14 = vpack.c.bf16 (!%p293_p3), %v528_v13, %v526_v12  ;;  %v525_v15 = vld [vmem:[%s1365_s4 + $0x20] sm:$0xff] (!%p293_p3)  ;;  %v527_v16 = vld [vmem:[%s1365_s4 + $0x30] sm:$0xff] (!%p293_p3)  ;;  %v530_v17 = vld [vmem:[%s1365_s4 + $0x48] sm:$0xff] (!%p293_p3)  ;;  %vm661_vm5 = vcmask (!%p293_p3), 130048  }
   0xa   : > { %916 = vmatprep.subr.bf16.mxu1 (!%p293_p3), %v915_v10  ;;  %v532_v18 = vld [vmem:[%s1365_s4 + $0x58] sm:$0xff] (!%p293_p3)  ;;  %v921_v19 = vpack.c.bf16 (!%p293_p3), %v527_v16, %v525_v15  ;;  %v529_v21 = vld [vmem:[%s1365_s4 + $0x40] sm:$0xff] (!%p293_p3)  ;;  %v531_v22 = vld [vmem:[%s1365_s4 + $0x50] sm:$0xff] (!%p293_p3) }
   0xb   : > { %918 = vmatpush1.bf16.msra.mxu1 (!%p293_p3), %v917_v11  ;;  %v923_v20 = vpack.c.bf16 (!%p293_p3), %v532_v18, %v530_v17  ;;  %v421_v23 = vld [vmem:[%s1364_s3] sm:$0xff] (!%p293_p3)  ;;  %v534_v24 = vld [vmem:[%s1365_s4 + $0x68] sm:$0xff] (!%p293_p3)  ;;  %v536_v25 = vld [vmem:[%s1365_s4 + $0x78] sm:$0xff] (!%p293_p3)  ;;  %v925_v26 = vpack.c.bf16 (!%p293_p3), %v531_v22, %v529_v21 }
   0xc   : > { %920 = vmatprep.subr.bf16.mxu1 (!%p293_p3), %v919_v14  ;;  %v927_v27 = vpack.c.bf16 (!%p293_p3), %v536_v25, %v534_v24  ;;  %v533_v28 = vld [vmem:[%s1365_s4 + $0x60] sm:$0xff] (!%p293_p3)  ;;  %v535_v29 = vld [vmem:[%s1365_s4 + $0x70] sm:$0xff] (!%p293_p3)  ;;  %v538_v30 = vld [vmem:[%s1365_s4 + $0x88] sm:$0xff] (!%p293_p3) }
   0xd   : > { %v540_v31 = vld [vmem:[%s1365_s4 + $0x98] sm:$0xff] (!%p293_p3)  ;;  %v929_v32 = vpack.c.bf16 (!%p293_p3), %v535_v29, %v533_v28  ;;  %v537_v34 = vld [vmem:[%s1365_s4 + $0x80] sm:$0xff] (!%p293_p3)  ;;  %v539_v35 = vld [vmem:[%s1365_s4 + $0x90] sm:$0xff] (!%p293_p3) }
   0xe   : > { %s1374_s24 = smov (!%p349_p4, %s1044_s24), 1  ;;  %v931_v33 = vpack.c.bf16 %v540_v31, %v538_v30  ;;  %v542_v36 = vld [vmem:[%s1365_s4 + $0xa8] sm:$0xff]  ;;  %v544_v37 = vld [vmem:[%s1365_s4 + $0xb8] sm:$0xff]  ;;  %v933_v38 = vpack.c.bf16 %v539_v35, %v537_v34  ;;  %v541_v40 = vld [vmem:[%s1365_s4 + $0xa0] sm:$0xff] }
   0xf   : > { %s881_s28 = sshll.u32 %s1374_s24, 4  ;;  %922 = vmatpush1.bf16.msra.mxu1 %v921_v19  ;;  %v935_v39 = vpack.c.bf16 %v544_v37, %v542_v36  ;;  %v543_v41 = vld [vmem:[%s1365_s4 + $0xb0] sm:$0xff]  ;;  %v546_v42 = vld [vmem:[%s1365_s4 + $0xc8] sm:$0xff]  ;;  %v548_v43 = vld [vmem:[%s1365_s4 + $0xd8] sm:$0xff] }
  0x10   : > { %s356_s8 = scalar_lea.vmem %s1361_s0, %s881_s28  ;;  %s883_s9 = sadd.s32 8, %s881_s28  ;;  %924 = vmatprep.subr.bf16.mxu1 %v923_v20  ;;  %v937_v44 = vpack.c.bf16 %v543_v41, %v541_v40  ;;  %v939_v45 = vpack.c.bf16 %v548_v43, %v546_v42  ;;  %v545_v46 = vld [vmem:[%s1365_s4 + $0xc0] sm:$0xff]  ;;  %v547_v47 = vld [vmem:[%s1365_s4 + $0xd0] sm:$0xff]  ;;  %v550_v48 = vld [vmem:[%s1365_s4 + $0xe8] sm:$0xff] }
  0x11   : > { %s365_s12 = scalar_lea.vmem %s1362_s1, %s883_s9  ;;  %v1127_v0 = vld [vmem:[%s356_s8] sm:$0xff]  ;;  %s1057_s8 = smov 126   ;;  %v552_v49 = vld [vmem:[%s1365_s4 + $0xf8] sm:$0xff]  ;;  %v941_v50 = vpack.c.bf16 %v547_v47, %v545_v46  ;;  %v551_v53 = vld [vmem:[%s1365_s4 + $0xf0] sm:$0xff] }
  0x12   : > { %v388_v1 = vld [vmem:[%s365_s12] sm:$0xff]  ;;  %s1058_s9 = smov 124   ;;  %v943_v51 = vpack.c.bf16 %v552_v49, %v550_v48  ;;  %v554_v54 = vld [vmem:[%s1365_s4 + $0x108] sm:$0xff]  ;;  %v556_v55 = vld [vmem:[%s1365_s4 + $0x118] sm:$0xff]  ;;  %s884_s12 = sshll.u32 %s1374_s24, 5 }
  0x13   : > { %v1013_v2 = vpack.i.bf16 %v388_v1, %v1127_v0  ;;  %926 = vmatpush1.bf16.msra.mxu1 %v925_v26  ;;  %v549_v52 = vld [vmem:[%s1365_s4 + $0xe0] sm:$0xff]  ;;  %v947_v57 = vpack.c.bf16 %v556_v55, %v554_v54  ;;  %v555_v59 = vld [vmem:[%s1365_s4 + $0x110] sm:$0xff]  ;;  %v558_v60 = vld [vmem:[%s1365_s4 + $0x128] sm:$0xff]  ;;  %s375_s15 = scalar_lea.vmem %s1366_s5, %s884_s12  ;;  %s385_s10 = scalar_lea.vmem %s1368_s7, %s884_s12 }
  0x14   : > { %928 = vmatprep.subr.bf16.mxu1 %v927_v27  ;;  %v945_v56 = vpack.c.bf16 %v551_v53, %v549_v52  ;;  %v553_v58 = vld [vmem:[%s1365_s4 + $0x100] sm:$0xff]  ;;  %v560_v61 = vld [vmem:[%s1365_s4 + $0x138] sm:$0xff]  ;;  %v562_v3 = vld [vmem:[%s1365_s4 + $0x148] sm:$0xff] }
  0x15   : > { %1014 = vrot.lane.b32.xlu0 %v1013_v2, %s1054_s13  ;;  %1024 = vrot.lane.b32.xlu1 %v1013_v2, %s1055_s14  ;;  %v949_v62 = vpack.c.bf16 %v555_v59, %v553_v58  ;;  %v951_v63 = vpack.c.bf16 %v560_v61, %v558_v60  ;;  %v564_v4 = vld [vmem:[%s1365_s4 + $0x158] sm:$0xff]  ;;  %v561_v7 = vld [vmem:[%s1365_s4 + $0x140] sm:$0xff] }
  0x16   : > { %v563_v8 = vld [vmem:[%s1365_s4 + $0x150] sm:$0xff]  ;;  %v566_v9 = vld [vmem:[%s1365_s4 + $0x168] sm:$0xff]  ;;  %v568_v10 = vld [vmem:[%s1365_s4 + $0x178] sm:$0xff] }
  0x17   : > { %930 = vmatpush1.bf16.msra.mxu1 %v929_v32  ;;  %v957_v11 = vpack.c.bf16 %v563_v8, %v561_v7  ;;  %v959_v12 = vpack.c.bf16 %v568_v10, %v566_v9  ;;  %v565_v13 = vld [vmem:[%s1365_s4 + $0x160] sm:$0xff]  ;;  %v567_v14 = vld [vmem:[%s1365_s4 + $0x170] sm:$0xff]  ;;  %v570_v15 = vld [vmem:[%s1365_s4 + $0x188] sm:$0xff] }
  0x18   : > { %932 = vmatprep.subr.bf16.mxu1 %v931_v33  ;;  %v572_v16 = vld [vmem:[%s1365_s4 + $0x198] sm:$0xff]  ;;  %v961_v17 = vpack.c.bf16 %v567_v14, %v565_v13  ;;  %v569_v19 = vld [vmem:[%s1365_s4 + $0x180] sm:$0xff]  ;;  %v571_v20 = vld [vmem:[%s1365_s4 + $0x190] sm:$0xff] }
  0x19   : > { %1019 = vrot.lane.b32.xlu0 %v1013_v2, %s1057_s8  ;;  %412 = vrot.lane.b32.xlu1 %v1127_v0, %s1058_s9  ;;  %v559_v2 = vld [vmem:[%s1365_s4 + $0x130] sm:$0xff]  ;;  %v963_v18 = vpack.c.bf16 %v572_v16, %v570_v15  ;;  %v574_v21 = vld [vmem:[%s1365_s4 + $0x1a8] sm:$0xff] }
  0x1a   : > { %v576_v22 = vld [vmem:[%s1365_s4 + $0x1b8] sm:$0xff]  ;;  %v573_v25 = vld [vmem:[%s1365_s4 + $0x1a0] sm:$0xff]  ;;  %v575_v26 = vld [vmem:[%s1365_s4 + $0x1b0] sm:$0xff] }
  0x1b   : > { %934 = vmatpush1.bf16.msra.mxu1 %v933_v38  ;;  %v967_v24 = vpack.c.bf16 %v576_v22, %v574_v21  ;;  %v578_v27 = vld [vmem:[%s1365_s4 + $0x1c8] sm:$0xff]  ;;  %v580_v28 = vld [vmem:[%s1365_s4 + $0x1d8] sm:$0xff]  ;;  %v969_v29 = vpack.c.bf16 %v575_v26, %v573_v25  ;;  %v577_v31 = vld [vmem:[%s1365_s4 + $0x1c0] sm:$0xff] }
  0x1c   : > { %936 = vmatprep.subr.bf16.mxu1 %v935_v39  ;;  %v971_v30 = vpack.c.bf16 %v580_v28, %v578_v27  ;;  %v579_v32 = vld [vmem:[%s1365_s4 + $0x1d0] sm:$0xff]  ;;  %v660_v52 = vld [vmem:[%s375_s15 + $0x18] sm:$0xff]  ;;  %v582_v54 = vld [vmem:[%s1365_s4 + $0x1e8] sm:$0xff] }
  0x1d   : > { %414 = vrot.lane.b32.xlu0 %v388_v1, %s1058_s9  ;;  %430 = vperm.xlu1 %1028, %v422_v6   ;;  %v557_v1 = vld [vmem:[%s1365_s4 + $0x120] sm:$0xff]  ;;  %v955_v6 = vpack.c.bf16 %v564_v4, %v562_v3  ;;  %v973_v33 = vpack.c.bf16 %v579_v32, %v577_v31  ;;  %v584_v55 = vld [vmem:[%s1365_s4 + $0x1f8] sm:$0xff]  ;;  %v659_v58 = vld [vmem:[%s375_s15 + $0x10] sm:$0xff] }
  0x1e   : > { %v953_v5 = vpack.c.bf16 %v559_v2, %v557_v1  ;;  %v581_v59 = vld [vmem:[%s1365_s4 + $0x1e0] sm:$0xff]  ;;  %v583_v60 = vld [vmem:[%s1365_s4 + $0x1f0] sm:$0xff] }
  0x1f   : > { %938 = vmatpush1.bf16.msra.mxu1 %v937_v44  ;;  %v656_v1 = vld [vmem:[%s1367_s6] sm:$0xff] }
  0x20   : > { %940 = vmatprep.subr.bf16.mxu1 %v939_v45 }
  0x21   : > { %425 = vperm.xlu0 %1029, %v421_v23   ;;  %v965_v23 = vpack.c.bf16 %v571_v20, %v569_v19 }
  0x23   : > { %942 = vmatpush1.bf16.msra.mxu1 %v941_v50 }
  0x24   : > { %944 = vmatprep.subr.bf16.mxu1 %v943_v51  ;;  %v658_v51 = vld [vmem:[%s375_s15 + $0x8] sm:$0xff] }
  0x25   : > { %v979_v53 = vpack.c.bf16 %v660_v52, %v658_v51 }
  0x27   : > { %946 = vmatpush1.bf16.msra.mxu1 %v945_v56  ;;  %v657_v56 = vld [vmem:[%s375_s15] sm:$0xff] }
  0x28   : > { %948 = vmatprep.subr.bf16.mxu1 %v947_v57  ;;  %v975_v57 = vpack.c.bf16 %v584_v55, %v582_v54  ;;  %v981_v61 = vpack.c.bf16 %v659_v58, %v657_v56 }
  0x2b   : > { %950 = vmatpush1.bf16.msra.mxu1 %v949_v62  ;;  %v977_v62 = vpack.c.bf16 %v583_v60, %v581_v59 }
  0x2c   : > { %952 = vmatprep.subr.bf16.mxu1 %v951_v63  ;;  %v1059_v63 = vmov 0.0  }
  0x2f   : > { %954 = vmatpush1.bf16.msra.mxu1 %v953_v5 }
  0x30   : > { %956 = vmatprep.subr.bf16.mxu1 %v955_v6 }
  0x33   : > { %958 = vmatpush1.bf16.msra.mxu1 %v957_v11 }
  0x34   : > { %960 = vmatprep.subr.bf16.mxu1 %v959_v12 }
  0x37   : > { %962 = vmatpush1.bf16.msra.mxu1 %v961_v17 }
  0x38   : > { %964 = vmatprep.subr.bf16.mxu1 %v963_v18 }
  0x3b   : > { %966 = vmatpush1.bf16.msra.mxu1 %v965_v23 }
  0x3c   : > { %968 = vmatprep.subr.bf16.mxu1 %v967_v24 }
  0x3f   : > { %970 = vmatpush1.bf16.msra.mxu1 %v969_v29 }
  0x40   : > { %972 = vmatprep.subr.bf16.mxu1 %v971_v30 }
  0x43   : > { %974 = vmatpush1.bf16.msra.mxu1 %v973_v33 }
  0x44   : > { %976 = vmatprep.subr.bf16.mxu1 %v975_v57 }
  0x47   : > { %978 = vmatpush1.bf16.msra.mxu1 %v977_v62 }
  0x87   : > { %v1015_v34 = vpop.permute.xlu0 %1014  ;;  %v1025_v35 = vpop.permute.xlu1 %1024 }
  0x88   : > { %v1017_v36 = vunpack.i.h.bf16 %v1015_v34  ;;  %v1016_v37 = vunpack.i.l.bf16 %v1015_v34  ;;  %v1027_v38 = vunpack.i.h.bf16 %v1025_v35  ;;  %v1026_v39 = vunpack.i.l.bf16 %v1025_v35 }
  0x8a   : > { %v396_v40 = vsel %vm395_vm1, %v1016_v37, %v1017_v36  ;;  %v410_v45 = vsel %vm409_vm2, %v1026_v39, %v1027_v38 }
  0x8b   : > { %v1020_v41 = vpop.permute.xlu0 %1019  ;;  %v907_v42 = vpack.c.bf16 %v396_v40, %v1127_v0  ;;  %v413_v46 = vpop.permute.xlu1 %412  ;;  %v420_v0 = vld [vmem:[%s1363_s2 + $0x8] sm:$0xff] }
  0x8c   : > { %v1022_v43 = vunpack.i.h.bf16 %v1020_v41  ;;  %v1021_v44 = vunpack.i.l.bf16 %v1020_v41 }
  0x8d   : > { %908 = vmatprep.subr.bf16.mxu0 %v907_v42 }
  0x8e   : > { %910 = vmatpush3.bf16.msra.mxu0 %v907_v42  ;;  %v403_v47 = vsel %vm402_vm3, %v1021_v44, %v1022_v43 }
  0x8f   : > { %v911_v48 = vpack.c.bf16 %v410_v45, %v403_v47  ;;  %v415_v49 = vpop.permute.xlu0 %414 }
  0x90   : > { %v417_v50 = vsel %vm416_vm4, %v413_v46, %v415_v49 }
  0x91   : > { %912 = vmatprep.subr.bf16.mxu0 %v911_v48 }
  0x92   : > { %914 = vmatpush3.bf16.msra.mxu0 %v911_v48 }
  0x93   : > { %902 = vmatprep.subr.mxu0 %v417_v50 }
  0x96   : > { %903 = vmatpush3.msra.mxu0 %v417_v50 }
  0x97   : > { %905 = vmatmul.mubr.msk.f32.vlgmr.msra.gmra.mrb[0].mxu0 %vm433_vm0, %v420_v0  ;;  %980 = vmatprep.subr.bf16.mxu0 %v979_v53 }
  0x98   : > { %982 = vmatpush1.bf16.msra.mxu0 %v981_v61  ;;  %729 = vmatprep.mubr.f32.mxu0 %v1059_v63 }
  0x9b   : > { %878 = vmatmul.mubr.msk.f32.vlgmr.msra.gmra.mrb[2].mxu0 %vm661_vm5, %v656_v1 }
  0x9c   : > { %v431_v2 = vpop.permute.xlu1 %430 }
  0xa0   : > { %v426_v3 = vpop.permute.xlu0 %425 }
 0x16a   : > { %v906_v4 = vpop.f32.mrb[0].mxu0 }
 0x16b   : > { %v512_v5 = vadd.f32 %v906_v4, %v431_v2  ;;  %v506_v6 = vpop.f32.mrb[1].mxu0 }
 0x16c   : > { %v507_v7 = vadd.f32 %v506_v6, %v426_v3 }
 0x16d   : > { %vm516_vm6 = vcmp.gt.f32.partialorder %v512_v5, 0.0  ;;  %v518_v8 = vmul.f32 0.2, %v512_v5 }
 0x16e   : > { %v517_v9 = vmul.f32 0.2, %v507_v7  ;;  %vm515_vm7 = vcmp.gt.f32.partialorder %v507_v7, 0.0  ;;  %v731_v12 = vpop.f32.mrb[2].mxu0 }
 0x16f   : > { %v520_v10 = vsel %vm516_vm6, %v512_v5, %v518_v8  ;;  %738 = vst [vmem:[%s385_s10 + $0x10] sm:$0xff] %v731_v12  ;;  %v733_v13 = vpop.f32.mrb[3].mxu0 }
 0x170   : > { %649 = vmatprep.mubr.f32.mxu1 %v520_v10  ;;  %v519_v11 = vsel %vm515_vm7, %v507_v7, %v517_v9  ;;  %739 = vst [vmem:[%s385_s10 + $0x18] sm:$0xff] %v733_v13 }
 0x171   : > { %650 = vmatmul.mubr.f32.vlgmr.msra.gmra.mrb[0].mxu1 %v519_v11 }
 0x244   : > { %v651_v14 = vpop.f32.mrb[0].mxu1 }
 0x245   : > { %736 = vst [vmem:[%s385_s10] sm:$0xff] %v651_v14  ;;  %v653_v15 = vpop.f32.mrb[1].mxu1 }
 0x246   : > { %737 = vst [vmem:[%s385_s10 + $0x8] sm:$0xff] %v653_v15 }
 0x247 PF: > { %s17_s26 = sadd.s32 1, %s1052_s26   ;;  %s1369_s24 = smov %s1048_s25 }
 0x248   : > { %p14_p5 = scmp.ge.s32.totalorder %s17_s26, 4   ;;  %s1370_s25 = smov %s1372_s27 }
 0x24a   :  { %16 = sbr.rel (!%p14_p5) target bundleno = 2 (0x2), region = 84 }

</bundles_post_ra>
